<compile_context>
chip_gen: v7x
topology: tpu7x:2x2x1
jax: 0.10.0
libtpu: 0.0.40
codegen_flags: <defaults>
</compile_context>

<pallas_src>
import functools

import jax
import jax.numpy as jnp
from jax import lax
from jax.experimental import pallas as pl
from jax.experimental.pallas import tpu as pltpu

_EPS = 1e-12  # F.normalize default eps


def _round_up(a, m):
    return ((a + m - 1) // m) * m


def _sublane_multiple(dtype):
    # 8 rows per sublane group for 32-bit, 16 for 16-bit, 32 for 8-bit dtypes.
    return {4: 8, 2: 16, 1: 32}.get(jnp.dtype(dtype).itemsize, 8)


def _x_normalize_kernel(x_ref, o_ref):
    # Row-wise L2 normalization: x / max(||x||, eps) via rsqrt of eps^2-clamped sum-sq.
    x = x_ref[...].astype(jnp.float32)
    ssq = jnp.sum(x * x, axis=-1, keepdims=True)
    o_ref[...] = (x * lax.rsqrt(jnp.maximum(ssq, _EPS * _EPS))).astype(o_ref.dtype)


def _fused_head_kernel(x_ref, w_ref, o_ref, wn_ref, *, normalize_x, compute_dtype):
    # Weight-norm (g == 1) fused in: normalize the raw weight tile once per
    # output-tile sweep (inner batch index == 0) into the VMEM scratch.  The weight
    # block index is constant along the inner (bi) axis, so the scratch stays valid
    # for every batch tile of this output tile.
    @pl.when(pl.program_id(1) == 0)
    def _():
        w = w_ref[...].astype(jnp.float32)
        wssq = jnp.sum(w * w, axis=-1, keepdims=True)
        wn_ref[...] = (w * lax.rsqrt(jnp.maximum(wssq, _EPS * _EPS))).astype(wn_ref.dtype)

    if normalize_x:
        x = x_ref[...].astype(jnp.float32)
        ssq = jnp.sum(x * x, axis=-1, keepdims=True)
        xn = (x * lax.rsqrt(jnp.maximum(ssq, _EPS * _EPS))).astype(compute_dtype)
    else:
        xn = x_ref[...]  # already row-normalized and in compute_dtype (prepass)

    # y = xn @ wn.T : transpose-free contraction on the shared last dim.
    y = lax.dot_general(
        xn, wn_ref[...],
        dimension_numbers=(((1,), (1,)), ((), ())),
        preferred_element_type=jnp.float32,
    )
    o_ref[...] = y.astype(o_ref.dtype)


def head_proba_l2norm(x, weight_v, *, tb=256, to=None,
                      compute_dtype=jnp.bfloat16,
                      vmem_budget_bytes=20 * 1024 * 1024):
    """Forward of HeadProbal2Norm.

    x:        (B, emb_dim)
    weight_v: (out_dim, emb_dim)  raw `v` of weight_norm (g is fixed to 1)
    returns:  (B, out_dim) in x.dtype
    """
    B, D = x.shape
    OUT, D2 = weight_v.shape
    assert D == D2, (D, D2)
    out_dtype = x.dtype
    cdt = jnp.dtype(compute_dtype)

    x_bytes = jnp.dtype(x.dtype).itemsize
    w_bytes = jnp.dtype(weight_v.dtype).itemsize
    c_bytes = cdt.itemsize
    o_bytes = jnp.dtype(out_dtype).itemsize

    # ---- batch tile: dtype-appropriate sublane multiple; pad B (zero rows normalize to 0) ----
    sub = max(_sublane_multiple(x.dtype), _sublane_multiple(cdt))
    tb_eff = max(sub, min(_round_up(tb, sub), _round_up(B, sub)))
    B_pad = _round_up(B, tb_eff)
    n_b = B_pad // tb_eff

    # ---- output-column tile: fit a VMEM budget; prefer a divisor of OUT (no weight pad) ----
    # Per out-tile VMEM: raw-weight double buffer + normalized-weight scratch + output
    # double buffer; x double buffer is the residual term.
    denom = D * (2 * w_bytes + c_bytes) + 2 * tb_eff * o_bytes
    x_resident = 2 * tb_eff * D * max(x_bytes, c_bytes)
    to_cap = max(128, max(vmem_budget_bytes - x_resident, 128 * denom) // denom)
    if to is not None:
        to_cap = min(to_cap, to)
    to_cap = max(128, (to_cap // 128) * 128)

    if OUT <= to_cap:
        to_eff, OUT_pad, w_p = OUT, OUT, weight_v
    else:
        to_eff = 0
        t = to_cap
        while t >= 128:
            if OUT % t == 0:
                to_eff = t
                break
            t -= 128
        if to_eff:
            OUT_pad, w_p = OUT, weight_v
        else:
            # Ragged OUT: fall back to padding the weight (rare for vocab-style heads).
            to_eff = to_cap
            OUT_pad = _round_up(OUT, to_eff)
            w_p = jnp.pad(weight_v, ((0, OUT_pad - OUT), (0, 0)))
    n_out = OUT_pad // to_eff

    x_p = x if B_pad == B else jnp.pad(x, ((0, B_pad - B), (0, 0)))

    # ---- hoist the x normalization when it would otherwise be repeated n_out times ----
    prenorm_x = n_out > 1
    if prenorm_x:
        x_p = pl.pallas_call(
            _x_normalize_kernel,
            out_shape=jax.ShapeDtypeStruct((B_pad, D), cdt),
            grid_spec=pltpu.PrefetchScalarGridSpec(
                num_scalar_prefetch=0,
                grid=(n_b,),
                in_specs=[pl.BlockSpec((tb_eff, D), lambda i: (i, 0))],
                out_specs=pl.BlockSpec((tb_eff, D), lambda i: (i, 0)),
            ),
            compiler_params=pltpu.CompilerParams(
                dimension_semantics=("parallel",)),
        )(x_p)

    xmat_bytes = jnp.dtype(x_p.dtype).itemsize

    # ---- fused (normalize-weight + matmul) pass ----
    vmem_est = (2 * to_eff * D * w_bytes          # raw weight double buffer
                + to_eff * D * c_bytes            # normalized-weight scratch
                + 2 * tb_eff * D * xmat_bytes     # x double buffer
                + 2 * tb_eff * to_eff * o_bytes)  # output double buffer
    vmem_limit = int(min(56 * 1024 * 1024, max(32 * 1024 * 1024, 2 * vmem_est)))

    cost = pl.CostEstimate(
        flops=2 * B_pad * OUT_pad * D,
        transcendentals=int(B_pad + OUT_pad),     # one rsqrt per normalized row
        bytes_accessed=int(n_out * B_pad * D * xmat_bytes
                           + OUT_pad * D * w_bytes
                           + B_pad * OUT_pad * o_bytes),
    )

    kernel = functools.partial(_fused_head_kernel,
                               normalize_x=not prenorm_x,
                               compute_dtype=cdt)

    y = pl.pallas_call(
        kernel,
        out_shape=jax.ShapeDtypeStruct((B_pad, OUT_pad), out_dtype),
        grid_spec=pltpu.PrefetchScalarGridSpec(
            num_scalar_prefetch=0,
            grid=(n_out, n_b),   # weight tile rides the outer axis -> resident across batch
            in_specs=[
                pl.BlockSpec((tb_eff, D), lambda oi, bi: (bi, 0)),   # x tile
                pl.BlockSpec((to_eff, D), lambda oi, bi: (oi, 0)),   # raw weight tile
            ],
            out_specs=pl.BlockSpec((tb_eff, to_eff), lambda oi, bi: (bi, oi)),
            scratch_shapes=[pltpu.VMEM((to_eff, D), cdt)],           # normalized weight
        ),
        compiler_params=pltpu.CompilerParams(
            dimension_semantics=("parallel", "arbitrary"),
            vmem_limit_bytes=vmem_limit,
        ),
        cost_estimate=cost,
    )(x_p, w_p)

    if B_pad != B or OUT_pad != OUT:
        y = y[:B, :OUT]
    return y


def _reference(x, weight_v):
    xn = x / jnp.maximum(jnp.linalg.norm(x, axis=-1, keepdims=True), _EPS)
    wn = weight_v / jnp.maximum(jnp.linalg.norm(weight_v, axis=-1, keepdims=True), _EPS)
    return xn @ wn.T


if __name__ == "__main__":
    key = jax.random.PRNGKey(0)
    kx, kw, kx2, kw2 = jax.random.split(key, 4)

    # ---- config 1: module defaults (emb_dim=256), small head & batch ----
    B, EMB, OUT = 8, 256, 128
    x = jax.random.normal(kx, (B, EMB), dtype=jnp.float32)
    weight_v = jax.random.normal(kw, (OUT, EMB), dtype=jnp.float32) * 0.02
    y_ref = _reference(x, weight_v)

    # Exact (f32 MXU operands) path — tight tolerance.
    y32 = jax.block_until_ready(head_proba_l2norm(x, weight_v, compute_dtype=jnp.float32))
    assert y32.shape == (B, OUT)
    assert jnp.allclose(y32, y_ref, atol=2e-5, rtol=2e-5), float(jnp.max(jnp.abs(y32 - y_ref)))

    # Default fast path (bf16 MXU operands) — deliberate precision/perf trade.
    ybf = jax.block_until_ready(head_proba_l2norm(x, weight_v))
    assert ybf.shape == (B, OUT)
    assert jnp.allclose(ybf, y_ref, atol=1e-2, rtol=1e-1), float(jnp.max(jnp.abs(ybf - y_ref)))

    # ---- config 2: exercises n_out > 1 (x prepass), n_b > 1, and B padding ----
    B2, OUT2 = 40, 512
    x2 = jax.random.normal(kx2, (B2, EMB), dtype=jnp.float32)
    w2 = jax.random.normal(kw2, (OUT2, EMB), dtype=jnp.float32) * 0.02
    y2 = jax.block_until_ready(
        head_proba_l2norm(x2, w2, tb=16, to=128, compute_dtype=jnp.float32))
    y2_ref = _reference(x2, w2)
    assert y2.shape == (B2, OUT2)
    assert jnp.allclose(y2, y2_ref, atol=1e-4, rtol=1e-4), float(jnp.max(jnp.abs(y2 - y2_ref)))

    print("KERNEL_OK")
</pallas_src>

<mosaic_0001>
module attributes {stable_mosaic.version = 11 : i64} {
  func.func @_fused_head_kernel(%arg0: i32, %arg1: i32, %arg2: memref<8x256xf32, #tpu.memory_space<vmem>>, %arg3: memref<128x256xf32, #tpu.memory_space<vmem>>, %arg4: memref<8x128xf32, #tpu.memory_space<vmem>>, %arg5: memref<128x256xf32, #tpu.memory_space<vmem>>) attributes {dimension_semantics = [#tpu.dimension_semantics<parallel>, #tpu.dimension_semantics<arbitrary>], iteration_bounds = array<i64: 1, 1>, scalar_prefetch = 0 : i64, scratch_operands = 1 : i64, tpu.core_type = #tpu.core_type<tc>, window_params = [{transform_indices = @transform_0, window_bounds = array<i64: 8, 256>}, {transform_indices = @transform_1, window_bounds = array<i64: 128, 256>}, {transform_indices = @transform_2, window_bounds = array<i64: 8, 128>}]} {
    %c0_i32 = arith.constant 0 : i32
    %0 = arith.cmpi eq, %arg1, %c0_i32 : i32
    %1 = arith.extui %0 : i1 to i32
    %c0_i32_0 = arith.constant 0 : i32
    %2 = arith.cmpi ne, %1, %c0_i32_0 : i32
    scf.if %2 {
      %c0_8 = arith.constant 0 : index
      %c0_9 = arith.constant 0 : index
      %15 = vector.load %arg3[%c0_8, %c0_9] : memref<128x256xf32, #tpu.memory_space<vmem>>, vector<128x256xf32>
      %16 = arith.mulf %15, %15 : vector<128x256xf32>
      %cst_10 = arith.constant dense<0.000000e+00> : vector<128xf32>
      %17 = vector.multi_reduction <add>, %16, %cst_10 [1] : vector<128x256xf32> to vector<128xf32>
      %18 = vector.shape_cast %17 : vector<128xf32> to vector<128x1xf32>
      %cst_11 = arith.constant 1.000000e-24 : f32
      %19 = vector.broadcast %cst_11 : f32 to vector<128x1xf32>
      %20 = arith.maximumf %18, %19 : vector<128x1xf32>
      %21 = math.rsqrt %20 : vector<128x1xf32>
      %22 = vector.broadcast %21 : vector<128x1xf32> to vector<128x256xf32>
      %23 = arith.mulf %15, %22 : vector<128x256xf32>
      %c0_12 = arith.constant 0 : index
      %c0_13 = arith.constant 0 : index
      %24 = vector.load %arg5[%c0_12, %c0_13] : memref<128x256xf32, #tpu.memory_space<vmem>>, vector<128x256xf32>
      tpu.vector_store %arg5[%c0_12, %c0_13], %23 {strides = array<i32>} : memref<128x256xf32, #tpu.memory_space<vmem>>, vector<128x256xf32>,
    } else {
    }
    %c0 = arith.constant 0 : index
    %c0_1 = arith.constant 0 : index
    %3 = vector.load %arg2[%c0, %c0_1] : memref<8x256xf32, #tpu.memory_space<vmem>>, vector<8x256xf32>
    %4 = arith.mulf %3, %3 : vector<8x256xf32>
    %cst = arith.constant dense<0.000000e+00> : vector<8xf32>
    %5 = vector.multi_reduction <add>, %4, %cst [1] : vector<8x256xf32> to vector<8xf32>
    %6 = vector.shape_cast %5 : vector<8xf32> to vector<8x1xf32>
    %cst_2 = arith.constant 1.000000e-24 : f32
    %7 = vector.broadcast %cst_2 : f32 to vector<8x1xf32>
    %8 = arith.maximumf %6, %7 : vector<8x1xf32>
    %9 = math.rsqrt %8 : vector<8x1xf32>
    %10 = vector.broadcast %9 : vector<8x1xf32> to vector<8x256xf32>
    %11 = arith.mulf %3, %10 : vector<8x256xf32>
    %c0_3 = arith.constant 0 : index
    %c0_4 = arith.constant 0 : index
    %12 = vector.load %arg5[%c0_3, %c0_4] : memref<128x256xf32, #tpu.memory_space<vmem>>, vector<128x256xf32>
    %cst_5 = arith.constant dense<0.000000e+00> : vector<8x128xf32>
    %13 = tpu.matmul %11, %12, %cst_5 {dimension_numbers = #tpu.dot_dimension_numbers<[1], [1], [0], [0], [0, 0, 1, 0], [], []>} : vector<8x256xf32>, vector<128x256xf32>, vector<8x128xf32> -> vector<8x128xf32>
    %c0_6 = arith.constant 0 : index
    %c0_7 = arith.constant 0 : index
    %14 = vector.load %arg4[%c0_6, %c0_7] : memref<8x128xf32, #tpu.memory_space<vmem>>, vector<8x128xf32>
    tpu.vector_store %arg4[%c0_6, %c0_7], %13 {strides = array<i32>} : memref<8x128xf32, #tpu.memory_space<vmem>>, vector<8x128xf32>,
    return
  }
  func.func @transform_0(%arg0: i32, %arg1: i32) -> (i32, i32) {
    %c0_i32 = arith.constant 0 : i32
    %c0_i32_0 = arith.constant 0 : i32
    return %arg1, %c0_i32 : i32, i32
  }
  func.func @transform_1(%arg0: i32, %arg1: i32) -> (i32, i32) {
    %c0_i32 = arith.constant 0 : i32
    %c0_i32_0 = arith.constant 0 : i32
    return %arg0, %c0_i32 : i32, i32
  }
  func.func @transform_2(%arg0: i32, %arg1: i32) -> (i32, i32) {
    %c0_i32 = arith.constant 0 : i32
    return %arg1, %arg0 : i32, i32
  }
}

</mosaic_0001>

<bundles_post_ra>
// kernel: tpu_custom_call.1
= control target key start
LH: loop header
LB: loop body
LE: loop exit
PB: predicated region body
PF: predicated region fallthrough
CT: control target
= control target key end

     0   :  { %7 = vsyncpa [#allocation4], 0  ;;  %s756_s0 = inlined_call_operand.hbm [shape: f32[8,256], index: 0, kind: input, shape index: {}]   ;;  %s757_s1 = inlined_call_operand.hbm [shape: f32[128,256], index: 1, kind: input, shape index: {}]   ;;  %s758_s2 = inlined_call_operand.hbm [shape: f32[8,128], index: 2, kind: output, shape index: {}]  }
   0x1   :  { %8 = vsyncpa [#allocation7], 0 }
   0x2   :  { %9 = vsyncpa [#allocation5], 0  ;;  %s523_s9 = smov [#allocation3]   ;;  %s524_s11 = smov [#allocation6]  }
   0x3   :  { %s16_s10 = sshll.u32 %s523_s9, 4  ;;  %s25_s12 = sshll.u32 %s524_s11, 4  ;;  %s17_s10 = int_to_ptr.vmem [resolvable:$true] %s16_s10  ;;  %s543_s12 = int_to_ptr.vmem [resolvable:$true] %s25_s12 }
   0x4   :  { %s451_s15 = scalar_lea.hbm %s756_s0, 256 }
   0x5   :  { %p452_p0 = scmp.ne.s32.totalorder %s756_s0, %s451_s15  ;;  %p455_p1 = scmp.lt.u32.totalorder %s451_s15, %s756_s0 }
   0x7   :  { %p457_p2 = pnand %p455_p1, %p452_p0 }
   0x9   :  { %460 = shalt.err (!%p457_p2)
}
   0xa   :  { %s461_s20 = scalar_lea.vmem %s17_s10, 256  ;;  %p466_p4 = scmp.lt.s32.totalorder %s17_s10, %s17_s10 }
   0xb   :  { %p462_p3 = scmp.ne.s32.totalorder %s17_s10, %s461_s20  ;;  %p467_p5 = scmp.lt.s32.totalorder %s461_s20, %s461_s20 }
   0xd   :  { %p468_p6 = por %p467_p5, %p466_p4 }
   0xf   :  { %p469_p7 = pnand %p468_p6, %p462_p3 }
  0x11   :  { %472 = shalt.err (!%p469_p7)
}
  0x12   :  { %19 = dma.hbm_to_vmem [thread:$0]  %s756_s0, 256, %s17_s10, [#allocation4]  }
  0x13   :  { %s473_s25 = scalar_lea.hbm %s757_s1, 4096 }
  0x14   :  { %p474_p8 = scmp.ne.s32.totalorder %s757_s1, %s473_s25  ;;  %p477_p9 = scmp.lt.u32.totalorder %s473_s25, %s757_s1 }
  0x16   :  { %p479_p10 = pnand %p477_p9, %p474_p8 }
  0x18   :  { %482 = shalt.err (!%p479_p10)
}
  0x19   :  { %s483_s30 = scalar_lea.vmem %s543_s12, 4096  ;;  %p488_p12 = scmp.lt.s32.totalorder %s543_s12, %s543_s12 }
  0x1a   :  { %p484_p11 = scmp.ne.s32.totalorder %s543_s12, %s483_s30  ;;  %p489_p13 = scmp.lt.s32.totalorder %s483_s30, %s483_s30 }
  0x1c   :  { %p490_p0 = por %p489_p13, %p488_p12 }
  0x1e   :  { %p491_p1 = pnand %p490_p0, %p484_p11 }
  0x20   :  { %494 = shalt.err (!%p491_p1)
}
  0x21   :  { %s525_s0 = smov 256   ;;  %s526_s3 = smov 16  }
  0x22   :  { %31 = dma.hbm_to_vmem [thread:$0]  %s757_s1, 4096, %s543_s12, [#allocation7], %s525_s0, %s525_s0, %s526_s3  }
  0x23   :  { %517 = dma.done.wait [#allocation4], 256  }
  0x24   :  { %518 = vsyncadd [#allocation4], 4294967040 }
  0x25   :  { %519 = dma.done.wait [#allocation7], 4096  }
  0x26   :  { %520 = vsyncadd [#allocation7], 4294963200  ;;  %v574_v0 = vld [vmem:[#allocation6] sm:$0xff]  ;;  %v576_v1 = vld [vmem:[#allocation6 + $0x8] sm:$0xff]  ;;  %s527_s1 = smov [#allocation8]  }
  0x27   :  { %v578_v2 = vld [vmem:[#allocation6 + $0x20] sm:$0xff]  ;;  %v74_v3 = vmul.f32 %v574_v0, %v574_v0  ;;  %v75_v4 = vmul.f32 %v576_v1, %v576_v1  ;;  %v584_v5 = vld [vmem:[#allocation6 + $0x28] sm:$0xff]  ;;  %v588_v7 = vld [vmem:[#allocation6 + $0x10] sm:$0xff]  ;;  %s370_s6 = sshll.u32 %s527_s1, 4  ;;  %s371_s6 = int_to_ptr.vmem [resolvable:$true] %s370_s6 }
  0x28   :  { %v78_v6 = vmul.f32 %v578_v2, %v578_v2  ;;  %v590_v8 = vld [vmem:[#allocation6 + $0x18] sm:$0xff]  ;;  %v79_v9 = vmul.f32 %v584_v5, %v584_v5  ;;  %v76_v10 = vmul.f32 %v588_v7, %v588_v7  ;;  %v598_v12 = vld [vmem:[#allocation6 + $0x30] sm:$0xff]  ;;  %v610_v19 = vld [vmem:[#allocation6 + $0x40] sm:$0xff]  ;;  %s495_s7 = scalar_lea.vmem %s371_s6, 128  ;;  %p500_p3 = scmp.lt.s32.totalorder %s371_s6, %s371_s6 }
  0x29   :  { %v77_v11 = vmul.f32 %v590_v8, %v590_v8  ;;  %v600_v13 = vld [vmem:[#allocation6 + $0x38] sm:$0xff]  ;;  %v602_v14 = vld [vmem:[#allocation6 + $0x50] sm:$0xff]  ;;  %v106_v15 = vadd.f32 %v75_v4, %v74_v3  ;;  %v80_v16 = vmul.f32 %v598_v12, %v598_v12  ;;  %v612_v20 = vld [vmem:[#allocation6 + $0x48] sm:$0xff]  ;;  %v82_v23 = vmul.f32 %v610_v19, %v610_v19  ;;  %p496_p2 = scmp.ne.s32.totalorder %s371_s6, %s495_s7  ;;  %p501_p4 = scmp.lt.s32.totalorder %s495_s7, %s495_s7 }
  0x2a   :  { %v81_v17 = vmul.f32 %v600_v13, %v600_v13  ;;  %v608_v18 = vld [vmem:[#allocation6 + $0x58] sm:$0xff]  ;;  %v112_v21 = vadd.f32 %v79_v9, %v78_v6  ;;  %v83_v24 = vmul.f32 %v612_v20, %v612_v20  ;;  %v84_v26 = vmul.f32 %v602_v14, %v602_v14  ;;  %v622_v28 = vld [vmem:[#allocation6 + $0x60] sm:$0xff]  ;;  %v624_v29 = vld [vmem:[#allocation6 + $0x68] sm:$0xff] }
  0x2b   :  { %107 = vadd.xlane.f32.xlu0 %v106_v15  ;;  %v109_v22 = vadd.f32 %v77_v11, %v76_v10  ;;  %v85_v27 = vmul.f32 %v608_v18, %v608_v18  ;;  %v626_v30 = vld [vmem:[#allocation6 + $0x70] sm:$0xff]  ;;  %v628_v31 = vld [vmem:[#allocation6 + $0x78] sm:$0xff]  ;;  %v86_v33 = vmul.f32 %v622_v28, %v622_v28  ;;  %v87_v34 = vmul.f32 %v624_v29, %v624_v29  ;;  %v638_v38 = vld [vmem:[#allocation6 + $0x80] sm:$0xff]  ;;  %p502_p5 = por %p501_p4, %p500_p3 }
  0x2c   :  { %113 = vadd.xlane.f32.xlu1 %v112_v21  ;;  %v115_v25 = vadd.f32 %v81_v17, %v80_v16  ;;  %v118_v32 = vadd.f32 %v83_v24, %v82_v23  ;;  %v88_v36 = vmul.f32 %v626_v30, %v626_v30  ;;  %v89_v37 = vmul.f32 %v628_v31, %v628_v31  ;;  %v640_v39 = vld [vmem:[#allocation6 + $0x88] sm:$0xff]  ;;  %v642_v40 = vld [vmem:[#allocation6 + $0x90] sm:$0xff]  ;;  %v644_v41 = vld [vmem:[#allocation6 + $0x98] sm:$0xff] }
  0x2d   :  { %v121_v35 = vadd.f32 %v85_v27, %v84_v26  ;;  %v124_v42 = vadd.f32 %v87_v34, %v86_v33  ;;  %v90_v43 = vmul.f32 %v638_v38, %v638_v38  ;;  %v91_v44 = vmul.f32 %v640_v39, %v640_v39  ;;  %v654_v48 = vld [vmem:[#allocation6 + $0xa0] sm:$0xff]  ;;  %v656_v49 = vld [vmem:[#allocation6 + $0xa8] sm:$0xff]  ;;  %v658_v50 = vld [vmem:[#allocation6 + $0xb0] sm:$0xff]  ;;  %p503_p6 = pnand %p502_p5, %p496_p2 }
  0x2e   :  { %v127_v45 = vadd.f32 %v89_v37, %v88_v36  ;;  %v92_v46 = vmul.f32 %v642_v40, %v642_v40  ;;  %v93_v47 = vmul.f32 %v644_v41, %v644_v41  ;;  %v660_v51 = vld [vmem:[#allocation6 + $0xb8] sm:$0xff]  ;;  %v94_v53 = vmul.f32 %v654_v48, %v654_v48  ;;  %v670_v58 = vld [vmem:[#allocation6 + $0xc0] sm:$0xff]  ;;  %v672_v59 = vld [vmem:[#allocation6 + $0xc8] sm:$0xff] }
  0x2f   :  { %110 = vadd.xlane.f32.xlu0 %v109_v22  ;;  %v130_v52 = vadd.f32 %v91_v44, %v90_v43  ;;  %v95_v54 = vmul.f32 %v656_v49, %v656_v49  ;;  %v96_v56 = vmul.f32 %v658_v50, %v658_v50  ;;  %v97_v57 = vmul.f32 %v660_v51, %v660_v51  ;;  %v674_v60 = vld [vmem:[#allocation6 + $0xd0] sm:$0xff]  ;;  %v676_v61 = vld [vmem:[#allocation6 + $0xd8] sm:$0xff]  ;;  %v686_v10 = vld [vmem:[#allocation6 + $0xe0] sm:$0xff] }
  0x30   :  { %116 = vadd.xlane.f32.xlu1 %v115_v25  ;;  %v133_v55 = vadd.f32 %v93_v47, %v92_v46  ;;  %v98_v63 = vmul.f32 %v670_v58, %v670_v58  ;;  %v99_v3 = vmul.f32 %v672_v59, %v672_v59  ;;  %v100_v6 = vmul.f32 %v674_v60, %v674_v60  ;;  %v688_v11 = vld [vmem:[#allocation6 + $0xe8] sm:$0xff]  ;;  %v690_v15 = vld [vmem:[#allocation6 + $0xf0] sm:$0xff]  ;;  %v692_v16 = vld [vmem:[#allocation6 + $0xf8] sm:$0xff] }
  0x31   :  { %v136_v62 = vadd.f32 %v95_v54, %v94_v53  ;;  %v139_v4 = vadd.f32 %v97_v57, %v96_v56  ;;  %v101_v9 = vmul.f32 %v676_v61, %v676_v61  ;;  %v102_v21 = vmul.f32 %v686_v10, %v686_v10  ;;  %v702_v26 = vld [vmem:[#allocation3] sm:$0xff]  ;;  %v704_v27 = vld [vmem:[#allocation3 + $0x8] sm:$0xff] }
  0x32   :  { %v142_v17 = vadd.f32 %v99_v3, %v98_v63  ;;  %v103_v22 = vmul.f32 %v688_v11, %v688_v11  ;;  %v104_v24 = vmul.f32 %v690_v15, %v690_v15  ;;  %v105_v25 = vmul.f32 %v692_v16, %v692_v16 }
  0x33   :  { %119 = vadd.xlane.f32.xlu0 %v118_v32  ;;  %v145_v23 = vadd.f32 %v101_v9, %v100_v6  ;;  %v252_v33 = vmul.f32 %v702_v26, %v702_v26  ;;  %v253_v34 = vmul.f32 %v704_v27, %v704_v27 }
  0x34   :  { %122 = vadd.xlane.f32.xlu1 %v121_v35  ;;  %v148_v32 = vadd.f32 %v103_v22, %v102_v21  ;;  %v151_v35 = vadd.f32 %v105_v25, %v104_v24 }
  0x35   :  { %v254_v36 = vadd.f32 %v253_v34, %v252_v33 }
  0x37   :  { %125 = vadd.xlane.f32.xlu0 %v124_v42 }
  0x38   :  { %128 = vadd.xlane.f32.xlu1 %v127_v45 }
  0x3b   :  { %131 = vadd.xlane.f32.xlu0 %v130_v52 }
  0x3c   :  { %134 = vadd.xlane.f32.xlu1 %v133_v55 }
  0x3f   :  { %137 = vadd.xlane.f32.xlu0 %v136_v62 }
  0x40   :  { %140 = vadd.xlane.f32.xlu1 %v139_v4 }
  0x43   :  { %143 = vadd.xlane.f32.xlu0 %v142_v17 }
  0x44   :  { %146 = vadd.xlane.f32.xlu1 %v145_v23 }
  0x47   :  { %149 = vadd.xlane.f32.xlu0 %v148_v32 }
  0x48   :  { %152 = vadd.xlane.f32.xlu1 %v151_v35 }
  0x4b   :  { %255 = vadd.xlane.f32.xlu0 %v254_v36 }
  0xb8   :  { %v108_v37 = vpop.xlane.xlu0 %107 }
  0xb9   :  { %v154_v42 = vmax.f32 %v108_v37, 1e-24  ;;  %v114_v43 = vpop.xlane.xlu1 %113 }
  0xba   :  { %v156_v44 = vmax.f32 %v114_v43, 1e-24 }
  0xbb   :  { %417 = vrsqrt.f32 %v154_v42 }
  0xbc   :  { %419 = vrsqrt.f32 %v156_v44  ;;  %v111_v45 = vpop.xlane.xlu0 %110 }
  0xbd   :  { %v155_v46 = vmax.f32 %v111_v45, 1e-24  ;;  %v117_v47 = vpop.xlane.xlu1 %116 }
  0xbe   :  { %v157_v52 = vmax.f32 %v117_v47, 1e-24 }
  0xbf   :  { %421 = vrsqrt.f32 %v155_v46 }
  0xc0   :  { %423 = vrsqrt.f32 %v157_v52  ;;  %v120_v53 = vpop.xlane.xlu0 %119 }
  0xc1   :  { %v123_v54 = vpop.xlane.xlu1 %122  ;;  %v158_v55 = vmax.f32 %v120_v53, 1e-24 }
  0xc2   :  { %v159_v56 = vmax.f32 %v123_v54, 1e-24 }
  0xc3   :  { %425 = vrsqrt.f32 %v158_v55 }
  0xc4   :  { %427 = vrsqrt.f32 %v159_v56  ;;  %v126_v57 = vpop.xlane.xlu0 %125 }
  0xc5   :  { %v418_v62 = vpop.eup %417  ;;  %v129_v63 = vpop.xlane.xlu1 %128  ;;  %v160_v4 = vmax.f32 %v126_v57, 1e-24 }
  0xc6   :  { %v420_v3 = vpop.eup %419  ;;  %v161_v6 = vmax.f32 %v129_v63, 1e-24  ;;  %v187_v21 = vmul.f32 %v418_v62, %v576_v1  ;;  %v186_v25 = vmul.f32 %v418_v62, %v574_v0 }
  0xc7   :  { %v191_v22 = vmul.f32 %v420_v3, %v584_v5  ;;  %429 = vrsqrt.f32 %v160_v4 }
  0xc8   :  { %v132_v9 = vpop.xlane.xlu0 %131  ;;  %431 = vrsqrt.f32 %v161_v6 }
  0xc9   :  { %v422_v17 = vpop.eup %421  ;;  %v135_v36 = vpop.xlane.xlu1 %134  ;;  %v162_v5 = vmax.f32 %v132_v9, 1e-24 }
  0xca   :  { %v424_v23 = vpop.eup %423  ;;  %v189_v24 = vmul.f32 %v422_v17, %v590_v8  ;;  %v188_v32 = vmul.f32 %v422_v17, %v588_v7  ;;  %v163_v44 = vmax.f32 %v135_v36, 1e-24 }
  0xcb   :  { %v193_v33 = vmul.f32 %v424_v23, %v600_v13  ;;  %v190_v13 = vmul.f32 %v420_v3, %v578_v2  ;;  %v192_v45 = vmul.f32 %v424_v23, %v598_v12  ;;  %433 = vrsqrt.f32 %v162_v5 }
  0xcc   :  { %v380_v34 = vpack.c.bf16 %v189_v24, %v187_v21  ;;  %v382_v35 = vpack.c.bf16 %v188_v32, %v186_v25  ;;  %v138_v37 = vpop.xlane.xlu0 %137  ;;  %435 = vrsqrt.f32 %v163_v44 }
  0xcd   :  { %v426_v42 = vpop.eup %425  ;;  %v384_v43 = vpack.c.bf16 %v193_v33, %v191_v22  ;;  %v141_v46 = vpop.xlane.xlu1 %140  ;;  %v386_v55 = vpack.c.bf16 %v192_v45, %v190_v13  ;;  %v164_v56 = vmax.f32 %v138_v37, 1e-24 }
  0xce   :  { %v428_v1 = vpop.eup %427  ;;  %381 = vmatprep.subr.bf16.mxu0 %v380_v34  ;;  %v195_v0 = vmul.f32 %v426_v42, %v612_v20  ;;  %v165_v57 = vmax.f32 %v141_v46, 1e-24  ;;  %v194_v20 = vmul.f32 %v426_v42, %v610_v19 }
  0xcf   :  { %383 = vmatpush1.bf16.xpose.msra.mxu0 %v382_v35  ;;  %v197_v7 = vmul.f32 %v428_v1, %v608_v18  ;;  %v196_v18 = vmul.f32 %v428_v1, %v602_v14  ;;  %437 = vrsqrt.f32 %v164_v56 }
  0xd0   :  { %385 = vmatprep.subr.bf16.mxu0 %v384_v43  ;;  %v144_v8 = vpop.xlane.xlu0 %143  ;;  %439 = vrsqrt.f32 %v165_v57 }
  0xd1   :  { %v430_v47 = vpop.eup %429  ;;  %v388_v52 = vpack.c.bf16 %v197_v7, %v195_v0  ;;  %v390_v3 = vpack.c.bf16 %v196_v18, %v194_v20  ;;  %v147_v9 = vpop.xlane.xlu1 %146  ;;  %v166_v21 = vmax.f32 %v144_v8, 1e-24 }
  0xd2   :  { %v432_v54 = vpop.eup %431  ;;  %v199_v2 = vmul.f32 %v430_v47, %v624_v29  ;;  %v198_v19 = vmul.f32 %v430_v47, %v622_v28  ;;  %v167_v22 = vmax.f32 %v147_v9, 1e-24 }
  0xd3   :  { %v201_v12 = vmul.f32 %v432_v54, %v628_v31  ;;  %v200_v14 = vmul.f32 %v432_v54, %v626_v30 }
  0xd4   :  { %v150_v53 = vpop.xlane.xlu0 %149 }
  0xd5   :  { %v434_v4 = vpop.eup %433  ;;  %v392_v6 = vpack.c.bf16 %v201_v12, %v199_v2  ;;  %v394_v24 = vpack.c.bf16 %v200_v14, %v198_v19  ;;  %v153_v33 = vpop.xlane.xlu1 %152  ;;  %v168_v35 = vmax.f32 %v150_v53, 1e-24 }
  0xd6   :  { %v436_v17 = vpop.eup %435  ;;  %v203_v29 = vmul.f32 %v434_v4, %v640_v39  ;;  %v202_v28 = vmul.f32 %v434_v4, %v638_v38  ;;  %v169_v37 = vmax.f32 %v153_v33, 1e-24 }
  0xd7   :  { %387 = vmatpush1.bf16.xpose.msra.mxu0 %v386_v55  ;;  %v205_v31 = vmul.f32 %v436_v17, %v644_v41  ;;  %v204_v30 = vmul.f32 %v436_v17, %v642_v40 }
  0xd8   :  { %389 = vmatprep.subr.bf16.mxu0 %v388_v52  ;;  %v256_v62 = vpop.xlane.xlu0 %255 }
  0xd9   :  { %v257_v63 = vmax.f32 %v256_v62, 1e-24  ;;  %v438_v23 = vpop.eup %437  ;;  %v396_v32 = vpack.c.bf16 %v205_v31, %v203_v29  ;;  %v398_v42 = vpack.c.bf16 %v204_v30, %v202_v28 }
  0xda   :  { %v440_v25 = vpop.eup %439  ;;  %v207_v39 = vmul.f32 %v438_v23, %v656_v49 }
  0xdb   :  { %441 = vrsqrt.f32 %v257_v63  ;;  %v209_v41 = vmul.f32 %v440_v25, %v660_v51  ;;  %v208_v38 = vmul.f32 %v440_v25, %v658_v50 }
  0xdc   :  { %443 = vrsqrt.f32 %v166_v21 }
  0xdd   :  { %445 = vrsqrt.f32 %v167_v22  ;;  %v400_v1 = vpack.c.bf16 %v209_v41, %v207_v39 }
  0xde   :  { %447 = vrsqrt.f32 %v168_v35 }
  0xdf   :  { %391 = vmatpush1.bf16.xpose.msra.mxu0 %v390_v3  ;;  %449 = vrsqrt.f32 %v169_v37 }
  0xe0   :  { %393 = vmatprep.subr.bf16.mxu0 %v392_v6 }
  0xe5   :  { %v442_v34 = vpop.eup %441 }
  0xe6   :  { %v260_v36 = vmul.f32 %v442_v34, %v704_v27  ;;  %v444_v43 = vpop.eup %443  ;;  %v206_v27 = vmul.f32 %v438_v23, %v654_v48  ;;  %v259_v52 = vmul.f32 %v442_v34, %v702_v26 }
  0xe7   :  { %395 = vmatpush1.bf16.xpose.msra.mxu0 %v394_v24  ;;  %v446_v5 = vpop.eup %445  ;;  %v211_v40 = vmul.f32 %v444_v43, %v672_v59  ;;  %v210_v8 = vmul.f32 %v444_v43, %v670_v58 }
  0xe8   :  { %397 = vmatprep.subr.bf16.mxu0 %v396_v32  ;;  %357 = vmatprep.mubr.f32.mxu0 %v260_v36  ;;  %v213_v44 = vmul.f32 %v446_v5, %v676_v61  ;;  %v402_v49 = vpack.c.bf16 %v208_v38, %v206_v27  ;;  %v448_v0 = vpop.eup %447  ;;  %v212_v13 = vmul.f32 %v446_v5, %v674_v60 }
  0xe9   :  { %v450_v7 = vpop.eup %449  ;;  %v215_v45 = vmul.f32 %v448_v0, %v688_v11  ;;  %v214_v59 = vmul.f32 %v448_v0, %v686_v10 }
  0xea   :  { %v404_v51 = vpack.c.bf16 %v213_v44, %v211_v40  ;;  %v217_v48 = vmul.f32 %v450_v7, %v692_v16  ;;  %v406_v50 = vpack.c.bf16 %v212_v13, %v210_v8  ;;  %v216_v61 = vmul.f32 %v450_v7, %v690_v15 }
  0xec   :  { %v408_v46 = vpack.c.bf16 %v217_v48, %v215_v45  ;;  %v410_v47 = vpack.c.bf16 %v216_v61, %v214_v59 }
  0xef   :  { %399 = vmatpush1.bf16.xpose.msra.mxu0 %v398_v42 }
  0xf0   :  { %401 = vmatprep.subr.bf16.mxu0 %v400_v1 }
  0xf7   :  { %403 = vmatpush1.bf16.xpose.msra.mxu0 %v402_v49 }
  0xf8   :  { %405 = vmatprep.subr.bf16.mxu0 %v404_v51 }
  0xff   :  { %407 = vmatpush1.bf16.xpose.msra.mxu0 %v406_v50 }
 0x100   :  { %409 = vmatprep.subr.bf16.mxu0 %v408_v46 }
 0x107   :  { %411 = vmatpush1.bf16.xpose.msra.mxu0 %v410_v47 }
 0x10e   :  { %358 = vmatmul.mubr.f32.vlgmr.msra.gmra.mrb[0].mxu0 %v259_v52 }
 0x1e1   :  { %v359_v58 = vpop.f32.mrb[0].mxu0 }
 0x1e2   :  { %363 = vst [vmem:[#allocation8] sm:$0xff] %v359_v58  ;;  %v361_v60 = vpop.f32.mrb[1].mxu0 }
 0x1e3   :  { %506 = shalt.err (!%p503_p6)
}
 0x1e4   :  { %s507_s10 = scalar_lea.hbm %s758_s2, 128 }
 0x1e5   :  { %p508_p7 = scmp.ne.s32.totalorder %s758_s2, %s507_s10  ;;  %p511_p8 = scmp.lt.u32.totalorder %s507_s10, %s758_s2 }
 0x1e7   :  { %p513_p9 = pnand %p511_p8, %p508_p7 }
 0x1e9   :  { %516 = shalt.err (!%p513_p9)
}
 0x1ea   :  { %373 = dma.vmem_to_hbm [thread:$0]  %s371_s6, 128, %s758_s2, [#allocation5]  }
 0x1eb   :  { %521 = dma.done.wait [#allocation5], 128  }
 0x1ec   :  { %522 = vsyncadd [#allocation5], 4294967168 }
 0x1ed   :  { %377 = vsyncpa [#allocation4], 1 }
 0x1ee   :  { %378 = vsyncpa [#allocation7], 1 }
 0x1ef   :  { %379 = vsyncpa [#allocation5], 1 }

</bundles_post_ra>
